<compile_context>
chip_gen: v5e
topology: v5e:2x2
jax: 0.10.0
libtpu: 0.0.40
codegen_flags: <defaults>
</compile_context>

<pallas_src>
import functools

import jax
import jax.numpy as jnp
from jax.experimental import pallas as pl
from jax.experimental.pallas import tpu as pltpu


def _sa_kernel(num_layers, has_points, *refs):
    """Fused (concat + 1x1 conv + folded BN + ReLU)* + running max over points.

    Layout: activations h are [C, TILE_N] (channels on sublanes, points on lanes).
    refs = (xyz_ref, [pts_ref], w0x, [w0p], b0, w1, b1, ..., o_ref, acc_ref)
    """
    acc_ref = refs[-1]          # VMEM (c_last, 1) f32 running max
    o_ref = refs[-2]            # (1, 1, c_last, 1) output block
    idx = 0
    xyz_ref = refs[idx]; idx += 1
    if has_points:
        pts_ref = refs[idx]; idx += 1
    wb = refs[idx:-2]

    ni = pl.program_id(2)
    n_inner = pl.num_programs(2)

    # ---- Layer 0: fused concat([xyz, points]) @ W0 as two small matmuls ----
    w_i = 0
    w0x = wb[w_i][...]; w_i += 1                     # (c1, 3)   bf16
    if has_points:
        w0p = wb[w_i][...]; w_i += 1                 # (c1, D)   bf16
    b0 = wb[w_i][...]; w_i += 1                      # (c1, 1)   f32

    h = jnp.dot(w0x, xyz_ref[0], preferred_element_type=jnp.float32)
    if has_points:
        h = h + jnp.dot(w0p, pts_ref[0], preferred_element_type=jnp.float32)
    h = jnp.maximum(h + b0, 0.0)                     # (c1, TN) f32

    # ---- Remaining 1x1-conv(+BN)+ReLU layers ----
    for _ in range(1, num_layers):
        w = wb[w_i][...]; w_i += 1                   # (c_out, c_in) bf16
        b = wb[w_i][...]; w_i += 1                   # (c_out, 1)    f32
        h = jnp.maximum(
            jnp.dot(w, h.astype(w.dtype), preferred_element_type=jnp.float32) + b,
            0.0)

    # ---- Running max over the point (lane) axis ----
    tile_max = jnp.max(h, axis=1, keepdims=True)     # (c_last, 1) f32

    @pl.when(ni == 0)
    def _():
        acc_ref[...] = tile_max

    @pl.when(ni > 0)
    def _():
        acc_ref[...] = jnp.maximum(acc_ref[...], tile_max)

    @pl.when(ni == n_inner - 1)
    def _():
        o_ref[0, 0] = acc_ref[...]


def pointshuffler_set_abstraction_group_all(xyz, points, weights, biases, *,
                                            tile_n=1024, num_splits=2):
    """xyz: [B,3,N], points: [B,D,N] or None.

    weights[i]: [C_out_i, C_in_i] (Conv2d 1x1 weight with BN folded, eval mode),
    biases[i]:  [C_out_i]         (BN folded).
    Returns (new_xyz [B,N,3], new_points [B,C_last,1]).
    """
    B, C, N = xyz.shape
    has_points = points is not None
    num_layers = len(weights)
    c_last = weights[-1].shape[0]
    compute_dtype = jnp.bfloat16

    # --- choose the outer (megacore-parallel) split and the inner tile size ---
    n_outer = num_splits if (num_splits >= 1 and N % num_splits == 0) else 1
    per_split = N // n_outer
    tn = min(tile_n, per_split)
    assert tn % 128 == 0 and per_split % tn == 0, (
        "N must be a multiple of num_splits * 128 (pad the point cloud)")
    n_inner = per_split // tn

    # --- inputs in native [B, C, N] layout (no transpose/concat pass in XLA) ---
    args = [xyz.astype(compute_dtype)]
    in_specs = [pl.BlockSpec((1, C, tn),
                             lambda bi, no, ni: (bi, 0, no * n_inner + ni))]
    if has_points:
        D = points.shape[1]
        args.append(points.astype(compute_dtype))
        in_specs.append(pl.BlockSpec((1, D, tn),
                                     lambda bi, no, ni: (bi, 0, no * n_inner + ni)))

    # --- weights / biases (first layer split into xyz / points halves) ---
    wbs, wb_specs = [], []

    def _add(arr):
        wbs.append(arr)
        wb_specs.append(pl.BlockSpec(arr.shape, lambda bi, no, ni: (0,) * arr.ndim))

    w0 = weights[0].astype(compute_dtype)            # (c1, C[+D])
    _add(w0[:, :C])
    if has_points:
        _add(w0[:, C:])
    _add(biases[0].astype(jnp.float32).reshape(-1, 1))
    for w, b in zip(weights[1:], biases[1:]):
        _add(w.astype(compute_dtype))
        _add(b.astype(jnp.float32).reshape(-1, 1))

    partial_max = pl.pallas_call(
        functools.partial(_sa_kernel, num_layers, has_points),
        out_shape=jax.ShapeDtypeStruct((B, n_outer, c_last, 1), jnp.float32),
        grid_spec=pltpu.PrefetchScalarGridSpec(
            num_scalar_prefetch=0,
            grid=(B, n_outer, n_inner),
            in_specs=in_specs + wb_specs,
            out_specs=pl.BlockSpec((1, 1, c_last, 1),
                                   lambda bi, no, ni: (bi, no, 0, 0)),
            scratch_shapes=[pltpu.VMEM((c_last, 1), jnp.float32)],
        ),
        compiler_params=pltpu.CompilerParams(
            dimension_semantics=("parallel", "parallel", "arbitrary")),
    )(*args, *wbs)

    new_points = jnp.max(partial_max, axis=1)        # [B, c_last, 1]
    new_xyz = jnp.transpose(xyz, (0, 2, 1))          # [B, N, 3] (module output)
    return new_xyz, new_points


def make_params(in_channel, mlp, key):
    """Deterministic Conv2d(k=1) + BatchNorm2d params, BN folded (eval mode)."""
    eps = 1e-5
    weights, biases = [], []
    last = in_channel
    for out_c in mlp:
        key, k1, k2 = jax.random.split(key, 3)
        conv_w = jax.random.normal(k1, (out_c, last), jnp.float32) * 0.1  # [out,in,1,1] squeezed
        conv_b = jax.random.normal(k2, (out_c,), jnp.float32) * 0.1
        # BN eval mode with default init: gamma=1, beta=0, mean=0, var=1
        gamma = jnp.ones((out_c,), jnp.float32)
        beta = jnp.zeros((out_c,), jnp.float32)
        run_mean = jnp.zeros((out_c,), jnp.float32)
        run_var = jnp.ones((out_c,), jnp.float32)
        scale = gamma / jnp.sqrt(run_var + eps)
        weights.append(conv_w * scale[:, None])          # [out, in]
        biases.append((conv_b - run_mean) * scale + beta)  # [out]
        last = out_c
    return weights, biases


def _reference(xyz, points, weights, biases, compute_dtype=jnp.bfloat16):
    # Matches the kernel's bf16 rounding of inputs/weights (f32 accumulation).
    xyz_t = jnp.transpose(xyz, (0, 2, 1))
    h = xyz_t.astype(compute_dtype).astype(jnp.float32)
    if points is not None:
        pts_t = jnp.transpose(points, (0, 2, 1)).astype(compute_dtype).astype(jnp.float32)
        h = jnp.concatenate([h, pts_t], axis=-1)
    for w, b in zip(weights, biases):
        wt = w.astype(compute_dtype).astype(jnp.float32)
        h = jnp.maximum(jnp.einsum("bnc,dc->bnd", h, wt) + b[None, None, :], 0.0)
    return xyz_t, jnp.max(h, axis=1)[..., None]


if __name__ == "__main__":
    B, C, D, N = 2, 3, 3, 2048
    mlp = [32, 64]
    in_channel = C + D

    key = jax.random.PRNGKey(0)
    key, kx, kp, kw = jax.random.split(key, 4)
    xyz = jax.random.normal(kx, (B, C, N), jnp.float32)
    points = jax.random.normal(kp, (B, D, N), jnp.float32)
    weights, biases = make_params(in_channel, mlp, kw)

    new_xyz, new_points = pointshuffler_set_abstraction_group_all(
        xyz, points, weights, biases, tile_n=512, num_splits=2)
    jax.block_until_ready(new_points)

    ref_xyz, ref_points = _reference(xyz, points, weights, biases)
    assert new_xyz.shape == (B, N, C)
    assert new_points.shape == (B, mlp[-1], 1)
    assert jnp.allclose(new_xyz, ref_xyz, atol=1e-5)
    assert jnp.allclose(new_points, ref_points, atol=3e-2, rtol=3e-2), (
        float(jnp.max(jnp.abs(new_points - ref_points))))

    print("KERNEL_OK")
</pallas_src>

<mosaic_0001>
module attributes {stable_mosaic.version = 11 : i64} {
  func.func @_sa_kernel(%arg0: i32, %arg1: i32, %arg2: i32, %arg3: memref<1x3x512xbf16, #tpu.memory_space<vmem>>, %arg4: memref<1x3x512xbf16, #tpu.memory_space<vmem>>, %arg5: memref<32x3xbf16, #tpu.memory_space<vmem>>, %arg6: memref<32x3xbf16, #tpu.memory_space<vmem>>, %arg7: memref<32x1xf32, #tpu.memory_space<vmem>>, %arg8: memref<64x32xbf16, #tpu.memory_space<vmem>>, %arg9: memref<64x1xf32, #tpu.memory_space<vmem>>, %arg10: memref<1x1x64x1xf32, #tpu.memory_space<vmem>>, %arg11: memref<64x1xf32, #tpu.memory_space<vmem>>) attributes {dimension_semantics = [#tpu.dimension_semantics<parallel>, #tpu.dimension_semantics<parallel>, #tpu.dimension_semantics<arbitrary>], iteration_bounds = array<i64: 2, 2, 2>, scalar_prefetch = 0 : i64, scratch_operands = 1 : i64, tpu.core_type = #tpu.core_type<tc>, window_params = [{transform_indices = @transform_0, window_bounds = array<i64: 1, 3, 512>}, {transform_indices = @transform_1, window_bounds = array<i64: 1, 3, 512>}, {pipeline_mode = #tpu.pipeline_mode<synchronous>, transform_indices = @transform_2, window_bounds = array<i64: 32, 3>}, {pipeline_mode = #tpu.pipeline_mode<synchronous>, transform_indices = @transform_3, window_bounds = array<i64: 32, 3>}, {pipeline_mode = #tpu.pipeline_mode<synchronous>, transform_indices = @transform_4, window_bounds = array<i64: 32, 1>}, {pipeline_mode = #tpu.pipeline_mode<synchronous>, transform_indices = @transform_5, window_bounds = array<i64: 64, 32>}, {pipeline_mode = #tpu.pipeline_mode<synchronous>, transform_indices = @transform_6, window_bounds = array<i64: 64, 1>}, {transform_indices = @transform_7, window_bounds = array<i64: 1, 1, 64, 1>}]} {
    %c0 = arith.constant 0 : index
    %c0_0 = arith.constant 0 : index
    %0 = vector.load %arg5[%c0, %c0_0] : memref<32x3xbf16, #tpu.memory_space<vmem>>, vector<32x3xbf16>
    %c0_1 = arith.constant 0 : index
    %c0_2 = arith.constant 0 : index
    %1 = vector.load %arg6[%c0_1, %c0_2] : memref<32x3xbf16, #tpu.memory_space<vmem>>, vector<32x3xbf16>
    %c0_3 = arith.constant 0 : index
    %c0_4 = arith.constant 0 : index
    %2 = vector.load %arg7[%c0_3, %c0_4] : memref<32x1xf32, #tpu.memory_space<vmem>>, vector<32x1xf32>
    %c0_5 = arith.constant 0 : index
    %c0_6 = arith.constant 0 : index
    %c0_7 = arith.constant 0 : index
    %3 = vector.load %arg3[%c0_5, %c0_6, %c0_7] : memref<1x3x512xbf16, #tpu.memory_space<vmem>>, vector<1x3x512xbf16>
    %4 = vector.shape_cast %3 : vector<1x3x512xbf16> to vector<3x512xbf16>
    %cst = arith.constant dense<0.000000e+00> : vector<32x512xf32>
    %5 = tpu.matmul %0, %4, %cst {dimension_numbers = #tpu.dot_dimension_numbers<[1], [0], [0], [1], [0, 0, 1, 1], [], []>} : vector<32x3xbf16>, vector<3x512xbf16>, vector<32x512xf32> -> vector<32x512xf32>
    %c0_8 = arith.constant 0 : index
    %c0_9 = arith.constant 0 : index
    %c0_10 = arith.constant 0 : index
    %6 = vector.load %arg4[%c0_8, %c0_9, %c0_10] : memref<1x3x512xbf16, #tpu.memory_space<vmem>>, vector<1x3x512xbf16>
    %7 = vector.shape_cast %6 : vector<1x3x512xbf16> to vector<3x512xbf16>
    %cst_11 = arith.constant dense<0.000000e+00> : vector<32x512xf32>
    %8 = tpu.matmul %1, %7, %cst_11 {dimension_numbers = #tpu.dot_dimension_numbers<[1], [0], [0], [1], [0, 0, 1, 1], [], []>} : vector<32x3xbf16>, vector<3x512xbf16>, vector<32x512xf32> -> vector<32x512xf32>
    %9 = arith.addf %5, %8 : vector<32x512xf32>
    %10 = vector.broadcast %2 : vector<32x1xf32> to vector<32x512xf32>
    %11 = arith.addf %9, %10 : vector<32x512xf32>
    %cst_12 = arith.constant 0.000000e+00 : f32
    %12 = vector.broadcast %cst_12 : f32 to vector<32x512xf32>
    %13 = arith.maximumf %11, %12 : vector<32x512xf32>
    %c0_13 = arith.constant 0 : index
    %c0_14 = arith.constant 0 : index
    %14 = vector.load %arg8[%c0_13, %c0_14] : memref<64x32xbf16, #tpu.memory_space<vmem>>, vector<64x32xbf16>
    %c0_15 = arith.constant 0 : index
    %c0_16 = arith.constant 0 : index
    %15 = vector.load %arg9[%c0_15, %c0_16] : memref<64x1xf32, #tpu.memory_space<vmem>>, vector<64x1xf32>
    %16 = arith.truncf %13 : vector<32x512xf32> to vector<32x512xbf16>
    %cst_17 = arith.constant dense<0.000000e+00> : vector<64x512xf32>
    %17 = tpu.matmul %14, %16, %cst_17 {dimension_numbers = #tpu.dot_dimension_numbers<[1], [0], [0], [1], [0, 0, 1, 1], [], []>} : vector<64x32xbf16>, vector<32x512xbf16>, vector<64x512xf32> -> vector<64x512xf32>
    %18 = vector.broadcast %15 : vector<64x1xf32> to vector<64x512xf32>
    %19 = arith.addf %17, %18 : vector<64x512xf32>
    %cst_18 = arith.constant 0.000000e+00 : f32
    %20 = vector.broadcast %cst_18 : f32 to vector<64x512xf32>
    %21 = arith.maximumf %19, %20 : vector<64x512xf32>
    %cst_19 = arith.constant dense<0xFF800000> : vector<64xf32>
    %22 = vector.multi_reduction <maximumf>, %21, %cst_19 [1] : vector<64x512xf32> to vector<64xf32>
    %23 = vector.shape_cast %22 : vector<64xf32> to vector<64x1xf32>
    %c0_i32 = arith.constant 0 : i32
    %24 = arith.cmpi eq, %arg2, %c0_i32 : i32
    %25 = arith.extui %24 : i1 to i32
    %c0_i32_20 = arith.constant 0 : i32
    %26 = arith.cmpi ne, %25, %c0_i32_20 : i32
    scf.if %26 {
      %c0_24 = arith.constant 0 : index
      %c0_25 = arith.constant 0 : index
      %33 = vector.load %arg11[%c0_24, %c0_25] : memref<64x1xf32, #tpu.memory_space<vmem>>, vector<64x1xf32>
      tpu.vector_store %arg11[%c0_24, %c0_25], %23 {strides = array<i32>} : memref<64x1xf32, #tpu.memory_space<vmem>>, vector<64x1xf32>,
    } else {
    }
    %c0_i32_21 = arith.constant 0 : i32
    %27 = arith.cmpi sgt, %arg2, %c0_i32_21 : i32
    %28 = arith.extui %27 : i1 to i32
    %c0_i32_22 = arith.constant 0 : i32
    %29 = arith.cmpi ne, %28, %c0_i32_22 : i32
    scf.if %29 {
      %c0_24 = arith.constant 0 : index
      %c0_25 = arith.constant 0 : index
      %33 = vector.load %arg11[%c0_24, %c0_25] : memref<64x1xf32, #tpu.memory_space<vmem>>, vector<64x1xf32>
      %34 = arith.maximumf %33, %23 : vector<64x1xf32>
      %c0_26 = arith.constant 0 : index
      %c0_27 = arith.constant 0 : index
      %35 = vector.load %arg11[%c0_26, %c0_27] : memref<64x1xf32, #tpu.memory_space<vmem>>, vector<64x1xf32>
      tpu.vector_store %arg11[%c0_26, %c0_27], %34 {strides = array<i32>} : memref<64x1xf32, #tpu.memory_space<vmem>>, vector<64x1xf32>,
    } else {
    }
    %c1_i32 = arith.constant 1 : i32
    %30 = arith.cmpi eq, %arg2, %c1_i32 : i32
    %31 = arith.extui %30 : i1 to i32
    %c0_i32_23 = arith.constant 0 : i32
    %32 = arith.cmpi ne, %31, %c0_i32_23 : i32
    scf.if %32 {
      %c0_24 = arith.constant 0 : index
      %c0_25 = arith.constant 0 : index
      %33 = vector.load %arg11[%c0_24, %c0_25] : memref<64x1xf32, #tpu.memory_space<vmem>>, vector<64x1xf32>
      %c0_26 = arith.constant 0 : index
      %c0_27 = arith.constant 0 : index
      %c0_28 = arith.constant 0 : index
      %c0_29 = arith.constant 0 : index
      %34 = vector.load %arg10[%c0_26, %c0_27, %c0_28, %c0_29] : memref<1x1x64x1xf32, #tpu.memory_space<vmem>>, vector<1x1x64x1xf32>
      %35 = vector.shape_cast %34 : vector<1x1x64x1xf32> to vector<64x1xf32>
      %36 = vector.shape_cast %33 : vector<64x1xf32> to vector<1x1x64x1xf32>
      tpu.vector_store %arg10[%c0_26, %c0_27, %c0_28, %c0_29], %36 {strides = array<i32>} : memref<1x1x64x1xf32, #tpu.memory_space<vmem>>, vector<1x1x64x1xf32>,
    } else {
    }
    return
  }
  func.func @transform_0(%arg0: i32, %arg1: i32, %arg2: i32) -> (i32, i32, i32) {
    %c2_i32 = arith.constant 2 : i32
    %0 = arith.muli %arg1, %c2_i32 : i32
    %1 = arith.addi %0, %arg2 : i32
    %c0_i32 = arith.constant 0 : i32
    %c0_i32_0 = arith.constant 0 : i32
    return %arg0, %c0_i32, %1 : i32, i32, i32
  }
  func.func @transform_1(%arg0: i32, %arg1: i32, %arg2: i32) -> (i32, i32, i32) {
    %c2_i32 = arith.constant 2 : i32
    %0 = arith.muli %arg1, %c2_i32 : i32
    %1 = arith.addi %0, %arg2 : i32
    %c0_i32 = arith.constant 0 : i32
    %c0_i32_0 = arith.constant 0 : i32
    return %arg0, %c0_i32, %1 : i32, i32, i32
  }
  func.func @transform_2(%arg0: i32, %arg1: i32, %arg2: i32) -> (i32, i32) {
    %c0_i32 = arith.constant 0 : i32
    %c0_i32_0 = arith.constant 0 : i32
    %c0_i32_1 = arith.constant 0 : i32
    return %c0_i32, %c0_i32_0 : i32, i32
  }
  func.func @transform_3(%arg0: i32, %arg1: i32, %arg2: i32) -> (i32, i32) {
    %c0_i32 = arith.constant 0 : i32
    %c0_i32_0 = arith.constant 0 : i32
    %c0_i32_1 = arith.constant 0 : i32
    return %c0_i32, %c0_i32_0 : i32, i32
  }
  func.func @transform_4(%arg0: i32, %arg1: i32, %arg2: i32) -> (i32, i32) {
    %c0_i32 = arith.constant 0 : i32
    %c0_i32_0 = arith.constant 0 : i32
    %c0_i32_1 = arith.constant 0 : i32
    return %c0_i32, %c0_i32_0 : i32, i32
  }
  func.func @transform_5(%arg0: i32, %arg1: i32, %arg2: i32) -> (i32, i32) {
    %c0_i32 = arith.constant 0 : i32
    %c0_i32_0 = arith.constant 0 : i32
    %c0_i32_1 = arith.constant 0 : i32
    return %c0_i32, %c0_i32_0 : i32, i32
  }
  func.func @transform_6(%arg0: i32, %arg1: i32, %arg2: i32) -> (i32, i32) {
    %c0_i32 = arith.constant 0 : i32
    %c0_i32_0 = arith.constant 0 : i32
    %c0_i32_1 = arith.constant 0 : i32
    return %c0_i32, %c0_i32_0 : i32, i32
  }
  func.func @transform_7(%arg0: i32, %arg1: i32, %arg2: i32) -> (i32, i32, i32, i32) {
    %c0_i32 = arith.constant 0 : i32
    %c0_i32_0 = arith.constant 0 : i32
    %c0_i32_1 = arith.constant 0 : i32
    return %arg0, %arg1, %c0_i32, %c0_i32_0 : i32, i32, i32, i32
  }
}

</mosaic_0001>

<bundles_post_ra>
// kernel: tpu_custom_call.1
= control target key start
LH: loop header
LB: loop body
LE: loop exit
PB: predicated region body
PF: predicated region fallthrough
CT: control target
= control target key end

     0   :  { %s1392_s24 = smov 0   ;;  %s1394_s25 = smov 0   ;;  %s1585_s0 = inlined_call_operand.vmem [shape: bf16[2,3,2048], index: 0, kind: input, shape index: {}]   ;;  %s1586_s1 = inlined_call_operand.vmem [shape: bf16[2,3,2048], index: 1, kind: input, shape index: {}]   ;;  %s1587_s2 = inlined_call_operand.vmem [shape: bf16[32,3], index: 2, kind: input, shape index: {}]   ;;  %s1588_s3 = inlined_call_operand.vmem [shape: bf16[32,3], index: 3, kind: input, shape index: {}]   ;;  %s1589_s4 = inlined_call_operand.vmem [shape: f32[32,1], index: 4, kind: input, shape index: {}]   ;;  %s1590_s5 = inlined_call_operand.vmem [shape: bf16[64,32], index: 5, kind: input, shape index: {}]   ;;  %s1591_s6 = inlined_call_operand.vmem [shape: f32[64,1], index: 6, kind: input, shape index: {}]   ;;  %s1592_s7 = inlined_call_operand.vmem [shape: f32[2,2,64,1], index: 7, kind: output, shape index: {}]  }
   0x1   :  { %s1396_s26 = smov 0   ;;  %s1398_s27 = smov 0  }
   0x2   :  { %s1400_s28 = smov 0   ;;  %s1402_s29 = smov 0  }
   0x3   :  { %s1404_s30 = smov 0  }
   0x4 LB: > { %s29_s8 = sadd.s32 1, %s1336_s27  ;;  %s32_s9 = sadd.s32 1, %s1340_s28  ;;  %s1348_s30 = sphi %s1404_s30, %s17_s30   ;;  %s1344_s29 = sphi %s1402_s29, %s1598_s29   ;;  %s1340_s28 = sphi %s1400_s28, %s1597_s28   ;;  %s1336_s27 = sphi %s1398_s27, %s1596_s27   ;;  %s1332_s26 = sphi %s1396_s26, %s1595_s26   ;;  %s1328_s25 = sphi %s1394_s25, %s1594_s25   ;;  %s1324_s24 = sphi %s1392_s24, %s1593_s24  }
   0x5   : > { %p30_p0 = scmp.ge.s32.totalorder %s29_s8, 2  ;;  %p1144_p1 = scmp.ge.s32.totalorder %s1348_s30, 1 }
   0x6   : > { %p298_p2 = scmp.lt.s32.totalorder %s1348_s30, 9  ;;  %s36_s10 = sadd.s32 1, %s1344_s29 }
   0x7   : > { %s1600_s8 = smov (%p30_p0, %s29_s8), 0  ;;  %s1602_s9 = smov (!%p30_p0, %s32_s9), %s1340_s28 }
   0x8   : > { %p299_p3 = pnand %p1144_p1, %p298_p2  ;;  %p34_p4 = scmp.ge.s32.totalorder %s1602_s9, 2 }
   0x9   : > { %s1145_s11 = sshll.u32 (!%p299_p3), %s1328_s25, 1  ;;  %p354_p6 = scmp.lt.s32.totalorder (!%p299_p3), %s1332_s26, 1 }
   0xa   : > { %s1604_s9 = smov (%p34_p4, %s1602_s9), 0  ;;  %s1606_s10 = smov (!%p34_p4, %s36_s10), %s1344_s29 }
   0xb   : > { %p38_p5 = scmp.ge.s32.totalorder %s1606_s10, 2  ;;  %302 = sbr.rel (%p299_p3) target bundleno = 594 (0x252), region = 48 }
   0xc   : > { %s352_s12 = sadd.s32 (!%p299_p3), %s1324_s24, %s1145_s11  ;;  %p381_p7 = scmp.lt.s32.totalorder (!%p299_p3), %s1328_s25, 1 }
   0xd   : > { %s1608_s10 = smov (%p38_p5, %s1606_s10), 0  ;;  %s1146_s13 = sshll.u32 (!%p299_p3), %s352_s12, 2 }
   0xe   : > { %p356_p8 = scmp.lt.s32.totalorder (!%p299_p3), %s1146_s13, 15  ;;  %p1220_p9 = scmp.ne.s32.totalorder (!%p299_p3), %s1324_s24, 0 }
  0x10   : > { %s1610_s26 = smov (!%p354_p6, %s1332_s26), 1  ;;  %s1612_s13 = smov (!%p356_p8, %s1146_s13), 15  ;;  %vm426_vm0 = vcmask 1040384   ;;  %vm427_vm1 = vcmask 1041408   ;;  %v1350_v1 = vmov 65535   ;;  %v1227_v13 = vld [vmem:[%s1588_s3] sm:$0xff] }
  0x11   : > { %s1147_s14 = sshll.u32 %s1610_s26, 4  ;;  %s1614_s25 = smov (!%p381_p7, %s1328_s25), 1  ;;  %v428_v2 = vsel %vm426_vm0, 4294967295, %v1350_v1  ;;  %vm419_vm2 = vcmask 23552   ;;  %v399_v14 = vld [vmem:[%s1589_s4 + $0x10] sm:$0xff]  ;;  %v397_v15 = vld [vmem:[%s1589_s4] sm:$0xff] }
  0x12   : > { %s359_s15 = sadd.s32 %s1147_s14, %s1612_s13  ;;  %s1153_s17 = sshll.u32 %s1614_s25, 3  ;;  %v429_v3 = vsel %vm427_vm1, %v428_v2, 0  ;;  %v1351_v16 = vmov 0   ;;  %v1228_v25 = vld [vmem:[%s1588_s3 + $0x8] sm:$0xff]  ;;  %v400_v26 = vld [vmem:[%s1589_s4 + $0x18] sm:$0xff]  ;;  %v682_v28 = vld [vmem:[%s1591_s6 + $0x10] sm:$0xff] }
  0x13   : > { %s1148_s16 = sshll.u32 %s359_s15, 1  ;;  %s385_s21 = sadd.s32 %s1153_s17, %s1147_s14  ;;  %1291 = vset.pattern.permute.xlu0 %v1351_v16  ;;  %1292 = vset.pattern.permute.xlu1 %v1351_v16  ;;  %v398_v27 = vld [vmem:[%s1589_s4 + $0x8] sm:$0xff]  ;;  %v683_v29 = vld [vmem:[%s1591_s6 + $0x18] sm:$0xff]  ;;  %v1225_v30 = vld [vmem:[%s1587_s2] sm:$0xff]  ;;  %vm756_vm3 = vcmask 261120  }
  0x14   : > { %s375_s20 = scalar_lea.vmem %s1586_s1, %s1148_s16  ;;  %s1155_s22 = sshll.u32 %s385_s21, 3  ;;  %632 = vperm.xlu0 %1291, %v399_v14   ;;  %622 = vperm.xlu1 %1292, %v397_v15   ;;  %v685_v31 = vld [vmem:[%s1591_s6 + $0x28] sm:$0xff]  ;;  %v686_v32 = vld [vmem:[%s1591_s6 + $0x30] sm:$0xff] }
  0x15   : > { %v402_v0 = vld [vmem:[%s375_s20] sm:$0xff]  ;;  %s1448_s12 = scalar_lea.vmem %s1592_s7, %s1155_s22  ;;  %s361_s25 = scalar_lea.vmem %s1585_s0, %s1148_s16  ;;  %1293 = vset.pattern.permute.xlu2 %v1351_v16  ;;  %v1226_v33 = vld [vmem:[%s1587_s2 + $0x8] sm:$0xff] }
  0x16   : > { %414 = vst [vmem:[#allocation1] ss:$4 sm:$0xff] %v402_v0  ;;  %v401_v4 = vld [vmem:[%s361_s25] sm:$0xff] }
  0x1c   : > { %637 = vperm.xlu0 %1291, %v400_v26   ;;  %627 = vperm.xlu1 %1292, %v398_v27  }
  0x1d   : > { %v415_v5 = vld.sshfl [vmem:[#allocation1] sm:$0xff pattern:$0x73625140]  ;;  %v416_v6 = vld.sshfl [vmem:[#allocation1 + $0x8] sm:$0xff pattern:$0x73625140] }
  0x1e   : > { %v430_v7 = vand.u32 %v429_v3, %v415_v5  ;;  %v432_v8 = vand.u32 %v429_v3, %v416_v6  ;;  %v417_v9 = vld.sshfl [vmem:[#allocation1 + $0x10] sm:$0xff pattern:$0x73625140]  ;;  %v418_v10 = vld.sshfl [vmem:[#allocation1 + $0x18] sm:$0xff pattern:$0x73625140] }
  0x1f   : > { %v434_v11 = vand.u32 %v429_v3, %v417_v9  ;;  %v436_v12 = vand.u32 %v429_v3, %v418_v10  ;;  %525 = vst [vmem:[#allocation1] ss:$4 sm:$0xff] %v401_v4 }
  0x20   : > { %445 = vmatpush.bf16.msra.mxu0 %v430_v7  ;;  %464 = vmatpush.bf16.msra.mxu1 %v432_v8 }
  0x21   : > { %483 = vmatpush.bf16.msra.mxu2 %v434_v11  ;;  %502 = vmatpush.bf16.msra.mxu3 %v436_v12 }
  0x23   : > { %1164 = vmatmul.msk.bf16.vlgmr.msra.gmra.mxu0 %vm419_vm2, %v1227_v13  ;;  %1166 = vmatmul.msk.bf16.vlgmr.msra.gmra.mxu1 %vm419_vm2, %v1227_v13 }
  0x24   : > { %1168 = vmatmul.msk.bf16.vlgmr.msra.gmra.mxu2 %vm419_vm2, %v1227_v13  ;;  %1170 = vmatmul.msk.bf16.vlgmr.msra.gmra.mxu3 %vm419_vm2, %v1227_v13 }
  0x25   : > { %708 = vperm.xlu0 %1291, %v682_v28   ;;  %713 = vperm.xlu1 %1292, %v683_v29  }
  0x26   : > { %v528_v17 = vld.sshfl [vmem:[#allocation1 + $0x10] sm:$0xff pattern:$0x73625140]  ;;  %v529_v18 = vld.sshfl [vmem:[#allocation1 + $0x18] sm:$0xff pattern:$0x73625140] }
  0x27   : > { %v540_v19 = vand.u32 %v528_v17, %v429_v3  ;;  %v542_v20 = vand.u32 %v529_v18, %v429_v3  ;;  %v526_v21 = vld.sshfl [vmem:[#allocation1] sm:$0xff pattern:$0x73625140]  ;;  %v527_v22 = vld.sshfl [vmem:[#allocation1 + $0x8] sm:$0xff pattern:$0x73625140] }
  0x28   : > { %v536_v23 = vand.u32 %v526_v21, %v429_v3  ;;  %v538_v24 = vand.u32 %v527_v22, %v429_v3 }
  0x29   : > { %589 = vmatpush.bf16.msrb.mxu2 %v540_v19  ;;  %608 = vmatpush.bf16.msrb.mxu3 %v542_v20 }
  0x2a   : > { %551 = vmatpush.bf16.msrb.mxu0 %v536_v23  ;;  %570 = vmatpush.bf16.msrb.mxu1 %v538_v24 }
  0x2d   : > { %723 = vperm.xlu0 %1291, %v685_v31   ;;  %728 = vperm.xlu1 %1292, %v686_v32  }
  0x33   : > { %1165 = vmatmul.msk.bf16.gmra.mxu0 %vm419_vm2, %v1228_v25  ;;  %1167 = vmatmul.msk.bf16.gmra.mxu1 %vm419_vm2, %v1228_v25 }
  0x34   : > { %1169 = vmatmul.msk.bf16.gmra.mxu2 %vm419_vm2, %v1228_v25  ;;  %1171 = vmatmul.msk.bf16.gmra.mxu3 %vm419_vm2, %v1228_v25 }
  0x43   : > { %1180 = vmatmul.msk.bf16.vlgmr.msrb.gmra.mxu0 %vm419_vm2, %v1225_v30  ;;  %1182 = vmatmul.msk.bf16.vlgmr.msrb.gmra.mxu1 %vm419_vm2, %v1225_v30 }
  0x44   : > { %1184 = vmatmul.msk.bf16.vlgmr.msrb.gmra.mxu2 %vm419_vm2, %v1225_v30  ;;  %1186 = vmatmul.msk.bf16.vlgmr.msrb.gmra.mxu3 %vm419_vm2, %v1225_v30 }
  0x53   : > { %1181 = vmatmul.msk.bf16.gmra.mxu0 %vm419_vm2, %v1226_v33  ;;  %1183 = vmatmul.msk.bf16.gmra.mxu1 %vm419_vm2, %v1226_v33 }
  0x54   : > { %1185 = vmatmul.msk.bf16.gmra.mxu2 %vm419_vm2, %v1226_v33  ;;  %1187 = vmatmul.msk.bf16.gmra.mxu3 %vm419_vm2, %v1226_v33 }
  0x86   : > { %v623_v56 = vpop.permute.xlu1 %622  ;;  %v633_v57 = vpop.permute.xlu0 %632 }
  0x8e   : > { %v628_v0 = vpop.permute.xlu1 %627  ;;  %v638_v13 = vpop.permute.xlu0 %637 }
  0xa0   : > { %v447_v34 = vpop.f32.mrf.mxu0  ;;  %v466_v35 = vpop.f32.mrf.mxu1 }
  0xa7   : > { %v485_v36 = vpop.f32.mrf.mxu2  ;;  %v504_v37 = vpop.f32.mrf.mxu3 }
  0xa8   : > { %v449_v38 = vpop.f32.mrf.mxu0  ;;  %v468_v39 = vpop.f32.mrf.mxu1 }
  0xaf   : > { %v487_v40 = vpop.f32.mrf.mxu2  ;;  %v506_v41 = vpop.f32.mrf.mxu3 }
  0xb0   : > { %v452_v42 = vpop.f32.mrf.mxu0  ;;  %v471_v43 = vpop.f32.mrf.mxu1 }
  0xb7   : > { %v490_v44 = vpop.f32.mrf.mxu2  ;;  %v509_v45 = vpop.f32.mrf.mxu3 }
  0xb8   : > { %v454_v46 = vpop.f32.mrf.mxu0  ;;  %v473_v47 = vpop.f32.mrf.mxu1 }
  0xbf   : > { %v492_v48 = vpop.f32.mrf.mxu2  ;;  %v511_v49 = vpop.f32.mrf.mxu3 }
  0xc0   : > { %v553_v50 = vpop.f32.mrf.mxu0  ;;  %v572_v51 = vpop.f32.mrf.mxu1 }
  0xc1   : > { %v554_v5 = vadd.f32 %v553_v50, %v447_v34  ;;  %v573_v6 = vadd.f32 %v572_v51, %v466_v35 }
  0xc3   : > { %v640_v18 = vadd.f32 %v623_v56, %v554_v5  ;;  %v641_v19 = vadd.f32 %v623_v56, %v573_v6  ;;  %v1232_v5 = vld [vmem:[%s1590_s5 + $0x18] sm:$0xff] }
  0xc7   : > { %v591_v52 = vpop.f32.mrf.mxu2  ;;  %v610_v53 = vpop.f32.mrf.mxu3 }
  0xc8   : > { %v555_v54 = vpop.f32.mrf.mxu0  ;;  %v574_v55 = vpop.f32.mrf.mxu1  ;;  %v592_v26 = vadd.f32 %v591_v52, %v485_v36  ;;  %v611_v27 = vadd.f32 %v610_v53, %v504_v37 }
  0xc9   : > { %v556_v1 = vadd.f32 %v555_v54, %v449_v38  ;;  %v575_v2 = vadd.f32 %v574_v55, %v468_v39 }
  0xcb   : > { %v644_v14 = vadd.f32 %v628_v0, %v556_v1  ;;  %v645_v15 = vadd.f32 %v628_v0, %v575_v2  ;;  %v681_v1 = vld [vmem:[%s1591_s6 + $0x8] sm:$0xff]  ;;  %v684_v2 = vld [vmem:[%s1591_s6 + $0x20] sm:$0xff] }
  0xcd   : > { %v660_v34 = vmax.f32 %v644_v14, 0.0  ;;  %v661_v35 = vmax.f32 %v645_v15, 0.0 }
  0xcf   : > { %v593_v58 = vpop.f32.mrf.mxu2  ;;  %v612_v59 = vpop.f32.mrf.mxu3 }
  0xd0   : > { %v558_v60 = vpop.f32.mrf.mxu0  ;;  %v577_v61 = vpop.f32.mrf.mxu1  ;;  %v594_v28 = vadd.f32 %v593_v58, %v487_v40  ;;  %v613_v29 = vadd.f32 %v612_v59, %v506_v41  ;;  %v642_v40 = vadd.f32 %v623_v56, %v592_v26  ;;  %v643_v41 = vadd.f32 %v623_v56, %v611_v27 }
  0xd1   : > { %v559_v62 = vadd.f32 %v558_v60, %v452_v42  ;;  %v578_v63 = vadd.f32 %v577_v61, %v471_v43 }
  0xd2   : > { %v658_v60 = vmax.f32 %v642_v40, 0.0  ;;  %v659_v61 = vmax.f32 %v643_v41, 0.0 }
  0xd3   : > { %v648_v9 = vadd.f32 %v633_v57, %v559_v62  ;;  %v649_v10 = vadd.f32 %v633_v57, %v578_v63  ;;  %v680_v63 = vld [vmem:[%s1591_s6] sm:$0xff] }
  0xd4   : > { %698 = vperm.xlu2 %1293, %v680_v63  }
  0xd5   : > { %v664_v22 = vmax.f32 %v648_v9, 0.0  ;;  %v665_v23 = vmax.f32 %v649_v10, 0.0 }
  0xd7   : > { %v596_v3 = vpop.f32.mrf.mxu2  ;;  %v615_v4 = vpop.f32.mrf.mxu3 }
  0xd8   : > { %v560_v7 = vpop.f32.mrf.mxu0  ;;  %v579_v8 = vpop.f32.mrf.mxu1  ;;  %v597_v20 = vadd.f32 %v596_v3, %v490_v44  ;;  %v616_v21 = vadd.f32 %v615_v4, %v509_v45  ;;  %v656_v44 = vmax.f32 %v640_v18, 0.0  ;;  %v657_v45 = vmax.f32 %v641_v19, 0.0  ;;  %v1231_v3 = vld [vmem:[%s1590_s5 + $0x10] sm:$0xff]  ;;  %v687_v4 = vld [vmem:[%s1591_s6 + $0x38] sm:$0xff] }
  0xd9   : > { %v561_v11 = vadd.f32 %v560_v7, %v454_v46  ;;  %v580_v12 = vadd.f32 %v579_v8, %v473_v47  ;;  %v646_v46 = vadd.f32 %v628_v0, %v594_v28  ;;  %v647_v47 = vadd.f32 %v628_v0, %v613_v29  ;;  %v1230_v0 = vld [vmem:[%s1590_s5 + $0x8] sm:$0xff] }
  0xda   : > { %v650_v38 = vadd.f32 %v633_v57, %v597_v20  ;;  %v651_v39 = vadd.f32 %v633_v57, %v616_v21  ;;  %v688_v50 = vpack.c.bf16 %v660_v34, %v656_v44  ;;  %v689_v51 = vpack.c.bf16 %v661_v35, %v657_v45  ;;  %v709_v35 = vpop.permute.xlu0 %708 }
  0xdb   : > { %v652_v16 = vadd.f32 %v638_v13, %v561_v11  ;;  %v653_v17 = vadd.f32 %v638_v13, %v580_v12  ;;  %v663_v57 = vmax.f32 %v647_v47, 0.0 }
  0xdc   : > { %v666_v52 = vmax.f32 %v650_v38, 0.0  ;;  %v667_v53 = vmax.f32 %v651_v39, 0.0  ;;  %703 = vperm.xlu2 %1293, %v681_v1  }
  0xdd   : > { %v668_v24 = vmax.f32 %v652_v16, 0.0  ;;  %v669_v25 = vmax.f32 %v653_v17, 0.0  ;;  %v691_v62 = vpack.c.bf16 %v663_v57, %v659_v61 }
  0xdf   : > { %v692_v30 = vpack.c.bf16 %v668_v24, %v664_v22  ;;  %v693_v31 = vpack.c.bf16 %v669_v25, %v665_v23  ;;  %v598_v32 = vpop.f32.mrf.mxu2  ;;  %v617_v33 = vpop.f32.mrf.mxu3 }
  0xe0   : > { %v599_v42 = vadd.f32 %v598_v32, %v492_v48  ;;  %v618_v43 = vadd.f32 %v617_v33, %v511_v49  ;;  %v1229_v48 = vld [vmem:[%s1590_s5] sm:$0xff]  ;;  %v662_v49 = vmax.f32 %v646_v46, 0.0 }
  0xe1   : > { %775 = vmatpush.bf16.msra.mxu0 %v692_v30  ;;  %804 = vmatpush.bf16.msra.mxu1 %v693_v31 }
  0xe2   : > { %v654_v36 = vadd.f32 %v638_v13, %v599_v42  ;;  %v655_v37 = vadd.f32 %v638_v13, %v618_v43  ;;  %v690_v56 = vpack.c.bf16 %v662_v49, %v658_v60 }
  0xe4   : > { %v670_v54 = vmax.f32 %v654_v36, 0.0  ;;  %v671_v55 = vmax.f32 %v655_v37, 0.0  ;;  %718 = vperm.xlu2 %1293, %v684_v2  }
  0xe5   : > { %776 = vmatpush.bf16.msra.mxu0 %v688_v50  ;;  %805 = vmatpush.bf16.msra.mxu1 %v689_v51 }
  0xe6   : > { %v694_v58 = vpack.c.bf16 %v670_v54, %v666_v52  ;;  %v695_v59 = vpack.c.bf16 %v671_v55, %v667_v53  ;;  %v714_v53 = vpop.permute.xlu1 %713 }
  0xe8   : > { %833 = vmatpush.bf16.msra.mxu2 %v694_v58  ;;  %862 = vmatpush.bf16.msra.mxu3 %v695_v59 }
  0xe9   : > { %1204 = vmatmul.msk.bf16.vlgmr.msra.gmra.mxu0 %vm756_vm3, %v1229_v48  ;;  %1208 = vmatmul.msk.bf16.vlgmr.msra.gmra.mxu1 %vm756_vm3, %v1229_v48 }
  0xec   : > { %834 = vmatpush.bf16.msra.mxu2 %v690_v56  ;;  %863 = vmatpush.bf16.msra.mxu3 %v691_v62 }
  0xed   : > { %733 = vperm.xlu2 %1293, %v687_v4  }
  0xef   : > { %1212 = vmatmul.msk.bf16.vlgmr.msra.gmra.mxu2 %vm756_vm3, %v1229_v48  ;;  %1216 = vmatmul.msk.bf16.vlgmr.msra.gmra.mxu3 %vm756_vm3, %v1229_v48 }
  0xf9   : > { %1205 = vmatmul.msk.bf16.gmra.mxu0 %vm756_vm3, %v1230_v0  ;;  %1209 = vmatmul.msk.bf16.gmra.mxu1 %vm756_vm3, %v1230_v0 }
  0xff   : > { %1213 = vmatmul.msk.bf16.gmra.mxu2 %vm756_vm3, %v1230_v0  ;;  %1217 = vmatmul.msk.bf16.gmra.mxu3 %vm756_vm3, %v1230_v0 }
 0x109   : > { %1206 = vmatmul.msk.bf16.gmra.mxu0 %vm756_vm3, %v1231_v3  ;;  %1210 = vmatmul.msk.bf16.gmra.mxu1 %vm756_vm3, %v1231_v3 }
 0x10f   : > { %1214 = vmatmul.msk.bf16.gmra.mxu2 %vm756_vm3, %v1231_v3  ;;  %1218 = vmatmul.msk.bf16.gmra.mxu3 %vm756_vm3, %v1231_v3 }
 0x119   : > { %1207 = vmatmul.msk.bf16.gmra.mxu0 %vm756_vm3, %v1232_v5  ;;  %1211 = vmatmul.msk.bf16.gmra.mxu1 %vm756_vm3, %v1232_v5 }
 0x11f   : > { %1215 = vmatmul.msk.bf16.gmra.mxu2 %vm756_vm3, %v1232_v5  ;;  %1219 = vmatmul.msk.bf16.gmra.mxu3 %vm756_vm3, %v1232_v5 }
 0x12e   : > { %v699_v8 = vpop.permute.xlu2 %698 }
 0x136   : > { %v704_v15 = vpop.permute.xlu2 %703 }
 0x13e   : > { %v719_v63 = vpop.permute.xlu2 %718 }
 0x166   : > { %v778_v6 = vpop.f32.mrf.mxu0  ;;  %v807_v7 = vpop.f32.mrf.mxu1 }
 0x167   : > { %v779_v9 = vadd.f32 %v778_v6, %v699_v8  ;;  %v808_v10 = vadd.f32 %v807_v7, %v699_v8 }
 0x169   : > { %v885_v13 = vmax.f32 %v779_v9, 0.0  ;;  %v886_v14 = vmax.f32 %v808_v10, 0.0 }
 0x16b   : > { %v917_v20 = vmax.f32 %v885_v13, %v886_v14 }
 0x16e   : > { %v780_v11 = vpop.f32.mrf.mxu0  ;;  %v809_v12 = vpop.f32.mrf.mxu1 }
 0x16f   : > { %v781_v21 = vadd.f32 %v780_v11, %v704_v15  ;;  %v810_v22 = vadd.f32 %v809_v12, %v704_v15 }
 0x171   : > { %v889_v28 = vmax.f32 %v781_v21, 0.0  ;;  %v890_v29 = vmax.f32 %v810_v22, 0.0 }
 0x172   : > { %v836_v16 = vpop.f32.mrf.mxu2  ;;  %v865_v17 = vpop.f32.mrf.mxu3 }
 0x173   : > { %v837_v18 = vadd.f32 %v836_v16, %v699_v8  ;;  %v866_v19 = vadd.f32 %v865_v17, %v699_v8  ;;  %v922_v43 = vmax.f32 %v889_v28, %v890_v29 }
 0x175   : > { %v887_v23 = vmax.f32 %v837_v18, 0.0  ;;  %v888_v24 = vmax.f32 %v866_v19, 0.0 }
 0x176   : > { %v783_v25 = vpop.f32.mrf.mxu0  ;;  %v812_v26 = vpop.f32.mrf.mxu1 }
 0x177   : > { %v918_v27 = vmax.f32 %v917_v20, %v887_v23  ;;  %v784_v38 = vadd.f32 %v783_v25, %v709_v35  ;;  %v813_v39 = vadd.f32 %v812_v26, %v709_v35  ;;  %v724_v20 = vpop.permute.xlu0 %723 }
 0x179   : > { %v919_v30 = vmax.f32 %v918_v27, %v888_v24  ;;  %v893_v36 = vmax.f32 %v784_v38, 0.0  ;;  %v894_v37 = vmax.f32 %v813_v39, 0.0 }
 0x17a   : > { %v838_v31 = vpop.f32.mrf.mxu2  ;;  %v867_v32 = vpop.f32.mrf.mxu3 }
 0x17b   : > { %v839_v33 = vadd.f32 %v838_v31, %v704_v15  ;;  %v868_v34 = vadd.f32 %v867_v32, %v704_v15  ;;  %920 = vmax.xlane.f32.xlu0 %v919_v30  ;;  %v927_v54 = vmax.f32 %v893_v36, %v894_v37 }
 0x17d   : > { %v891_v42 = vmax.f32 %v839_v33, 0.0  ;;  %v892_v46 = vmax.f32 %v868_v34, 0.0 }
 0x17e   : > { %v785_v44 = vpop.f32.mrf.mxu0  ;;  %v814_v45 = vpop.f32.mrf.mxu1 }
 0x17f   : > { %v923_v47 = vmax.f32 %v922_v43, %v891_v42  ;;  %v786_v55 = vadd.f32 %v785_v44, %v714_v53  ;;  %v815_v48 = vadd.f32 %v814_v45, %v714_v53 }
 0x181   : > { %v924_v40 = vmax.f32 %v923_v47, %v892_v46  ;;  %v897_v61 = vmax.f32 %v786_v55, 0.0  ;;  %v898_v56 = vmax.f32 %v815_v48, 0.0 }
 0x182   : > { %v841_v41 = vpop.f32.mrf.mxu2  ;;  %v870_v50 = vpop.f32.mrf.mxu3 }
 0x183   : > { %v842_v51 = vadd.f32 %v841_v41, %v709_v35  ;;  %v871_v52 = vadd.f32 %v870_v50, %v709_v35  ;;  %925 = vmax.xlane.f32.xlu1 %v924_v40  ;;  %v932_v6 = vmax.f32 %v897_v61, %v898_v56  ;;  %v729_v35 = vpop.permute.xlu1 %728 }
 0x185   : > { %v895_v49 = vmax.f32 %v842_v51, 0.0  ;;  %v896_v60 = vmax.f32 %v871_v52, 0.0 }
 0x186   : > { %v788_v57 = vpop.f32.mrf.mxu0  ;;  %v817_v58 = vpop.f32.mrf.mxu1 }
 0x187   : > { %v928_v59 = vmax.f32 %v927_v54, %v895_v49  ;;  %v789_v4 = vadd.f32 %v788_v57, %v719_v63  ;;  %v818_v5 = vadd.f32 %v817_v58, %v719_v63 }
 0x189   : > { %v929_v62 = vmax.f32 %v928_v59, %v896_v60  ;;  %v901_v12 = vmax.f32 %v789_v4, 0.0  ;;  %v902_v13 = vmax.f32 %v818_v5, 0.0 }
 0x18a   : > { %v843_v0 = vpop.f32.mrf.mxu2  ;;  %v872_v1 = vpop.f32.mrf.mxu3 }
 0x18b   : > { %v844_v2 = vadd.f32 %v843_v0, %v714_v53  ;;  %v873_v3 = vadd.f32 %v872_v1, %v714_v53  ;;  %930 = vmax.xlane.f32.xlu2 %v929_v62  ;;  %v937_v19 = vmax.f32 %v901_v12, %v902_v13  ;;  %v734_v53 = vpop.permute.xlu2 %733 }
 0x18d   : > { %v899_v7 = vmax.f32 %v844_v2, 0.0  ;;  %v900_v11 = vmax.f32 %v873_v3, 0.0 }
 0x18e   : > { %v790_v8 = vpop.f32.mrf.mxu0  ;;  %v819_v9 = vpop.f32.mrf.mxu1 }
 0x18f   : > { %v933_v10 = vmax.f32 %v932_v6, %v899_v7  ;;  %v791_v21 = vadd.f32 %v790_v8, %v724_v20  ;;  %v820_v22 = vadd.f32 %v819_v9, %v724_v20 }
 0x191   : > { %v934_v14 = vmax.f32 %v933_v10, %v900_v11  ;;  %v905_v28 = vmax.f32 %v791_v21, 0.0  ;;  %v906_v29 = vmax.f32 %v820_v22, 0.0 }
 0x192   : > { %v846_v15 = vpop.f32.mrf.mxu2  ;;  %v875_v16 = vpop.f32.mrf.mxu3 }
 0x193   : > { %935 = vmax.xlane.f32.xlu2 %v934_v14  ;;  %v847_v17 = vadd.f32 %v846_v15, %v719_v63  ;;  %v876_v18 = vadd.f32 %v875_v16, %v719_v63  ;;  %v942_v38 = vmax.f32 %v905_v28, %v906_v29 }
 0x195   : > { %v903_v23 = vmax.f32 %v847_v17, 0.0  ;;  %v904_v26 = vmax.f32 %v876_v18, 0.0 }
 0x196   : > { %v793_v24 = vpop.f32.mrf.mxu0  ;;  %v822_v25 = vpop.f32.mrf.mxu1 }
 0x197   : > { %v938_v27 = vmax.f32 %v937_v19, %v903_v23  ;;  %v794_v39 = vadd.f32 %v793_v24, %v729_v35  ;;  %v823_v42 = vadd.f32 %v822_v25, %v729_v35 }
 0x199   : > { %v939_v30 = vmax.f32 %v938_v27, %v904_v26  ;;  %v909_v46 = vmax.f32 %v794_v39, 0.0  ;;  %v910_v47 = vmax.f32 %v823_v42, 0.0 }
 0x19a   : > { %v848_v31 = vpop.f32.mrf.mxu2  ;;  %v877_v32 = vpop.f32.mrf.mxu3 }
 0x19b   : > { %v849_v33 = vadd.f32 %v848_v31, %v724_v20  ;;  %v878_v34 = vadd.f32 %v877_v32, %v724_v20  ;;  %940 = vmax.xlane.f32.xlu0 %v939_v30  ;;  %v947_v54 = vmax.f32 %v909_v46, %v910_v47 }
 0x19d   : > { %v907_v43 = vmax.f32 %v849_v33, 0.0  ;;  %v908_v45 = vmax.f32 %v878_v34, 0.0 }
 0x19e   : > { %v795_v37 = vpop.f32.mrf.mxu0  ;;  %v824_v40 = vpop.f32.mrf.mxu1 }
 0x19f   : > { %v943_v44 = vmax.f32 %v942_v38, %v907_v43  ;;  %v796_v48 = vadd.f32 %v795_v37, %v734_v53  ;;  %v825_v49 = vadd.f32 %v824_v40, %v734_v53 }
 0x1a1   : > { %v944_v36 = vmax.f32 %v943_v44, %v908_v45  ;;  %v913_v59 = vmax.f32 %v796_v48, 0.0  ;;  %v914_v60 = vmax.f32 %v825_v49, 0.0 }
 0x1a2   : > { %v851_v41 = vpop.f32.mrf.mxu2  ;;  %v880_v50 = vpop.f32.mrf.mxu3 }
 0x1a3   : > { %v852_v51 = vadd.f32 %v851_v41, %v729_v35  ;;  %v881_v52 = vadd.f32 %v880_v50, %v729_v35  ;;  %945 = vmax.xlane.f32.xlu1 %v944_v36  ;;  %v952_v1 = vmax.f32 %v913_v59, %v914_v60 }
 0x1a5   : > { %v911_v55 = vmax.f32 %v852_v51, 0.0  ;;  %v912_v58 = vmax.f32 %v881_v52, 0.0 }
 0x1a7   : > { %v948_v57 = vmax.f32 %v947_v54, %v911_v55 }
 0x1a9   : > { %v949_v61 = vmax.f32 %v948_v57, %v912_v58 }
 0x1aa   : > { %v853_v56 = vpop.f32.mrf.mxu2  ;;  %v882_v62 = vpop.f32.mrf.mxu3 }
 0x1ab   : > { %v854_v63 = vadd.f32 %v853_v56, %v734_v53  ;;  %v883_v0 = vadd.f32 %v882_v62, %v734_v53  ;;  %950 = vmax.xlane.f32.xlu2 %v949_v61 }
 0x1ad   : > { %v915_v2 = vmax.f32 %v854_v63, 0.0  ;;  %v916_v4 = vmax.f32 %v883_v0, 0.0 }
 0x1af   : > { %v953_v3 = vmax.f32 %v952_v1, %v915_v2 }
 0x1b1   : > { %v954_v5 = vmax.f32 %v953_v3, %v916_v4 }
 0x1b3   : > { %955 = vmax.xlane.f32.xlu0 %v954_v5 }
 0x1ee   : > { %v921_v6 = vpop.xlane.xlu0 %920 }
 0x1f6   : > { %v926_v7 = vpop.xlane.xlu1 %925 }
 0x1fe   : > { %v931_v8 = vpop.xlane.xlu2 %930 }
 0x206   : > { %v936_v9 = vpop.xlane.xlu2 %935 }
 0x20e   : > { %v941_v10 = vpop.xlane.xlu0 %940 }
 0x216   : > { %v946_v11 = vpop.xlane.xlu1 %945 }
 0x21e   : > { %v951_v12 = vpop.xlane.xlu2 %950 }
 0x222   : > { %960 = sbr.rel (%p1220_p9) target bundleno = 560 (0x230), region = 52 }
 0x226   : > { %v956_v13 = vpop.xlane.xlu0 %955 }
 0x227   : > { %vm961_vm4 = vcmask 7168  }
 0x228   : > { %962 = vst.msk [vmem:[#allocation2] sm:$0xff] %vm961_vm4, %v921_v6 }
 0x229   : > { %963 = vst.msk [vmem:[#allocation2 + $0x8] sm:$0xff] %vm961_vm4, %v926_v7 }
 0x22a   : > { %964 = vst.msk [vmem:[#allocation2 + $0x10] sm:$0xff] %vm961_vm4, %v931_v8 }
 0x22b   : > { %965 = vst.msk [vmem:[#allocation2 + $0x18] sm:$0xff] %vm961_vm4, %v936_v9 }
 0x22c   : > { %966 = vst.msk [vmem:[#allocation2 + $0x20] sm:$0xff] %vm961_vm4, %v941_v10 }
 0x22d   : > { %967 = vst.msk [vmem:[#allocation2 + $0x28] sm:$0xff] %vm961_vm4, %v946_v11 }
 0x22e   : > { %968 = vst.msk [vmem:[#allocation2 + $0x30] sm:$0xff] %vm961_vm4, %v951_v12 }
 0x22f   : > { %969 = vst.msk [vmem:[#allocation2 + $0x38] sm:$0xff] %vm961_vm4, %v956_v13 }
 0x230 PF: > { %p1221_p10 = scmp.le.s32.totalorder %s1324_s24, 0 }
 0x232   : > { %973 = sbr.rel (%p1221_p10) target bundleno = 578 (0x242), region = 56 }
 0x237   : > { %v974_v14 = vld [vmem:[#allocation2] sm:$0xff]  ;;  %vm990_vm5 = vcmask 7168   ;;  %v975_v15 = vld [vmem:[#allocation2 + $0x8] sm:$0xff]  ;;  %v976_v16 = vld [vmem:[#allocation2 + $0x10] sm:$0xff] }
 0x238   : > { %v982_v17 = vmax.f32 %v974_v14, %v921_v6  ;;  %v983_v18 = vmax.f32 %v975_v15, %v926_v7  ;;  %v984_v19 = vmax.f32 %v976_v16, %v931_v8  ;;  %v977_v20 = vld [vmem:[#allocation2 + $0x18] sm:$0xff]  ;;  %v978_v21 = vld [vmem:[#allocation2 + $0x20] sm:$0xff]  ;;  %v979_v22 = vld [vmem:[#allocation2 + $0x28] sm:$0xff] }
 0x239   : > { %v985_v23 = vmax.f32 %v977_v20, %v936_v9  ;;  %v980_v24 = vld [vmem:[#allocation2 + $0x30] sm:$0xff]  ;;  %v986_v25 = vmax.f32 %v978_v21, %v941_v10  ;;  %v981_v26 = vld [vmem:[#allocation2 + $0x38] sm:$0xff]  ;;  %v987_v27 = vmax.f32 %v979_v22, %v946_v11 }
 0x23a   : > { %991 = vst.msk [vmem:[#allocation2] sm:$0xff] %vm990_vm5, %v982_v17  ;;  %v988_v28 = vmax.f32 %v980_v24, %v951_v12  ;;  %v989_v29 = vmax.f32 %v981_v26, %v956_v13 }
 0x23b   : > { %992 = vst.msk [vmem:[#allocation2 + $0x8] sm:$0xff] %vm990_vm5, %v983_v18 }
 0x23c   : > { %993 = vst.msk [vmem:[#allocation2 + $0x10] sm:$0xff] %vm990_vm5, %v984_v19 }
 0x23d   : > { %994 = vst.msk [vmem:[#allocation2 + $0x18] sm:$0xff] %vm990_vm5, %v985_v23 }
 0x23e   : > { %995 = vst.msk [vmem:[#allocation2 + $0x20] sm:$0xff] %vm990_vm5, %v986_v25 }
 0x23f   : > { %996 = vst.msk [vmem:[#allocation2 + $0x28] sm:$0xff] %vm990_vm5, %v987_v27 }
 0x240   : > { %997 = vst.msk [vmem:[#allocation2 + $0x30] sm:$0xff] %vm990_vm5, %v988_v28 }
 0x241   : > { %998 = vst.msk [vmem:[#allocation2 + $0x38] sm:$0xff] %vm990_vm5, %v989_v29 }
 0x242 PF: > { %p1222_p11 = scmp.ne.s32.totalorder %s1324_s24, 1 }
 0x244   : > { %1002 = sbr.rel (%p1222_p11) target bundleno = 594 (0x252), region = 60 }
 0x249   : > { %v1003_v30 = vld [vmem:[#allocation2] sm:$0xff]  ;;  %vm1011_vm6 = vcmask 7168   ;;  %v1004_v31 = vld [vmem:[#allocation2 + $0x8] sm:$0xff]  ;;  %v1005_v32 = vld [vmem:[#allocation2 + $0x10] sm:$0xff] }
 0x24a   : > { %1012 = vst.msk [vmem:[%s1448_s12] sm:$0xff] %vm1011_vm6, %v1003_v30  ;;  %v1006_v33 = vld [vmem:[#allocation2 + $0x18] sm:$0xff]  ;;  %v1007_v34 = vld [vmem:[#allocation2 + $0x20] sm:$0xff]  ;;  %v1008_v35 = vld [vmem:[#allocation2 + $0x28] sm:$0xff] }
 0x24b   : > { %1013 = vst.msk [vmem:[%s1448_s12 + $0x8] sm:$0xff] %vm1011_vm6, %v1004_v31  ;;  %v1009_v38 = vld [vmem:[#allocation2 + $0x30] sm:$0xff]  ;;  %v1010_v39 = vld [vmem:[#allocation2 + $0x38] sm:$0xff] }
 0x24c   : > { %1014 = vst.msk [vmem:[%s1448_s12 + $0x10] sm:$0xff] %vm1011_vm6, %v1005_v32 }
 0x24d   : > { %1015 = vst.msk [vmem:[%s1448_s12 + $0x18] sm:$0xff] %vm1011_vm6, %v1006_v33 }
 0x24e   : > { %1016 = vst.msk [vmem:[%s1448_s12 + $0x20] sm:$0xff] %vm1011_vm6, %v1007_v34 }
 0x24f   : > { %1017 = vst.msk [vmem:[%s1448_s12 + $0x28] sm:$0xff] %vm1011_vm6, %v1008_v35 }
 0x250   : > { %1018 = vst.msk [vmem:[%s1448_s12 + $0x30] sm:$0xff] %vm1011_vm6, %v1009_v38 }
 0x251   : > { %1019 = vst.msk [vmem:[%s1448_s12 + $0x38] sm:$0xff] %vm1011_vm6, %v1010_v39 }
 0x252 PF: > { %s17_s30 = sadd.s32 1, %s1348_s30   ;;  %s1593_s24 = smov %s1336_s27 }
 0x253   : > { %p14_p12 = scmp.ge.s32.totalorder %s17_s30, 10   ;;  %s1594_s25 = smov %s1340_s28 }
 0x254   : > { %s1595_s26 = smov %s1344_s29  ;;  %s1596_s27 = smov %s1600_s8 }
 0x255   : > { %s1597_s28 = smov %s1604_s9  ;;  %s1598_s29 = smov %s1608_s10 }
 0x256   :  { %16 = sbr.rel (!%p14_p12) target bundleno = 4 (0x4), region = 93 }

</bundles_post_ra>
